<compile_context>
chip_gen: v7x
topology: tpu7x:2x2x1
jax: 0.10.0
libtpu: 0.0.40
codegen_flags: <defaults>
</compile_context>

<pallas_src>
import functools

import jax
import jax.numpy as jnp
from jax.experimental import pallas as pl
from jax.experimental.pallas import tpu as pltpu


def _round_up(n, m):
    return ((n + m - 1) // m) * m


def _classifier_generator_kernel(x_ref, w1_ref, b1_ref, wh_ref, bh_ref,
                                 out_ref, *, o):
    # shared_net: Linear + ReLU  (MXU matmul, f32 accumulate, VPU max)
    h = jnp.dot(x_ref[...], w1_ref[...], preferred_element_type=jnp.float32)
    h = jnp.maximum(h + b1_ref[...], 0.0)

    # fused packed heads: one MXU matmul -> lane-dense [tile_b, slab_w] slab
    # cols [0:o) = mu, [o:2o) = sigma, [2o:) = padding (sliced away in wrapper)
    s = jnp.dot(h, wh_ref[...], preferred_element_type=jnp.float32) + bh_ref[...]

    # lane mask: sigma (and padding) lanes get softplus, mu lanes pass through
    lane = jax.lax.broadcasted_iota(jnp.int32, s.shape, dimension=1)
    is_sigma = lane >= o

    # softplus(beta=1, threshold=20), numerically stable form (EUP exp/log1p)
    sp = jnp.maximum(s, 0.0) + jnp.log1p(jnp.exp(-jnp.abs(s)))
    out_ref[...] = jnp.where(is_sigma & (s <= 20.0), sp, s).astype(out_ref.dtype)


def prepare_params(params):
    """Hoisted (once per parameter set) layout plumbing: pad hidden dim to 128
    lanes and pack mu|sigma heads contiguously into one fused weight/bias."""
    f32 = jnp.float32
    I, H = params["w1"].shape
    O = params["wmu"].shape[1]

    LANE = 128
    h_pad = _round_up(max(H, LANE), LANE)
    slab_w = _round_up(max(2 * O, LANE), LANE)   # packed mu|sigma slab width

    w1_p = jnp.zeros((I, h_pad), f32).at[:, :H].set(params["w1"].astype(f32))
    b1_p = jnp.zeros((1, h_pad), f32).at[:, :H].set(params["b1"].astype(f32))

    wh_p = (jnp.zeros((h_pad, slab_w), f32)
            .at[:H, :O].set(params["wmu"].astype(f32))
            .at[:H, O:2 * O].set(params["wsig"].astype(f32)))
    bh_p = (jnp.zeros((1, slab_w), f32)
            .at[:, :O].set(params["bmu"].astype(f32))
            .at[:, O:2 * O].set(params["bsig"].astype(f32)))

    return {"w1": w1_p, "b1": b1_p, "wh": wh_p, "bh": bh_p,
            "I": I, "H": H, "O": O, "slab_w": slab_w}


def classifier_generator_forward(x, fused, *, max_tile_b=2048,
                                 out_dtype=jnp.float32):
    """x: [B, input_size]. fused: output of prepare_params()."""
    B, I = x.shape
    assert I == fused["I"], "input feature dim mismatch"
    O = fused["O"]
    slab_w = fused["slab_w"]
    h_pad = fused["w1"].shape[1]

    # ---- batch tiling: evenly cover B, >=2 grid steps for v7x dual-TC ----
    b_rounded = _round_up(B, 8)
    n_steps = pl.cdiv(b_rounded, max(8, max_tile_b))
    if b_rounded > 8:
        n_steps = max(n_steps, 2)          # keep both v7x TCs busy (no-op v5e/v6e)
    tile_b = _round_up(pl.cdiv(b_rounded, n_steps), 8)
    b_pad = n_steps * tile_b

    x = x.astype(jnp.float32)
    if b_pad != B:
        # pad batch rows only; the feature dim is passed at full width so no
        # lane-padding copy of x is ever materialized.
        x = jnp.zeros((b_pad, I), jnp.float32).at[:B, :].set(x)

    grid = (n_steps,)

    out = pl.pallas_call(
        functools.partial(_classifier_generator_kernel, o=O),
        out_shape=jax.ShapeDtypeStruct((b_pad, slab_w), out_dtype),
        grid=grid,
        in_specs=[
            pl.BlockSpec((tile_b, I), lambda i: (i, 0)),       # x: streamed, full feature dim
            pl.BlockSpec((I, h_pad), lambda i: (0, 0)),        # W1: VMEM-resident
            pl.BlockSpec((1, h_pad), lambda i: (0, 0)),        # b1: VMEM-resident
            pl.BlockSpec((h_pad, slab_w), lambda i: (0, 0)),   # packed mu|sigma weight
            pl.BlockSpec((1, slab_w), lambda i: (0, 0)),       # packed mu|sigma bias
        ],
        out_specs=pl.BlockSpec((tile_b, slab_w), lambda i: (i, 0)),
        compiler_params=pltpu.CompilerParams(
            dimension_semantics=("parallel",)),
    )(x, fused["w1"], fused["b1"], fused["wh"], fused["bh"])

    mu = out[:B, :O]
    sigma = out[:B, O:2 * O]
    return mu, sigma


def init_params(key, input_size, hidden_size, output_size):
    """Deterministic synthetic init (matches nn.Linear's uniform fan-in init)."""
    ks = jax.random.split(key, 6)

    def lin(kw, kb, fan_in, fan_out):
        bound = 1.0 / jnp.sqrt(fan_in)
        # stored as [in, out] (transposed vs. PyTorch's [out, in])
        w = jax.random.uniform(kw, (fan_in, fan_out), jnp.float32, -bound, bound)
        b = jax.random.uniform(kb, (1, fan_out), jnp.float32, -bound, bound)
        return w, b

    w1, b1 = lin(ks[0], ks[1], input_size, hidden_size)
    wmu, bmu = lin(ks[2], ks[3], hidden_size, output_size)
    wsig, bsig = lin(ks[4], ks[5], hidden_size, output_size)
    return {"w1": w1, "b1": b1, "wmu": wmu, "bmu": bmu, "wsig": wsig, "bsig": bsig}


def _reference(x, p):
    h = jnp.maximum(x @ p["w1"] + p["b1"], 0.0)
    mu = h @ p["wmu"] + p["bmu"]
    s = h @ p["wsig"] + p["bsig"]
    sp = jnp.maximum(s, 0.0) + jnp.log1p(jnp.exp(-jnp.abs(s)))
    sigma = jnp.where(s > 20.0, s, sp)
    return mu, sigma


if __name__ == "__main__":
    key = jax.random.PRNGKey(0)
    k_x, k_p = jax.random.split(key)

    B, input_size, hidden_size, output_size = 16, 32, 32, 16
    x = jax.random.normal(k_x, (B, input_size), jnp.float32)
    params = init_params(k_p, input_size, hidden_size, output_size)

    fused = prepare_params(params)          # once per parameter set
    # B=16 -> 2 grid steps of 8 rows (exercises the gridded path and v7x split);
    # large-batch inference uses up to 2048 rows per step automatically.
    mu, sigma = classifier_generator_forward(x, fused)
    jax.block_until_ready((mu, sigma))

    mu_ref, sigma_ref = _reference(x, params)
    assert mu.shape == (B, output_size) and sigma.shape == (B, output_size)
    assert jnp.allclose(mu, mu_ref, atol=1e-5, rtol=1e-5)
    assert jnp.allclose(sigma, sigma_ref, atol=1e-5, rtol=1e-5)
    assert bool(jnp.all(sigma >= 0.0))

    print("KERNEL_OK")
</pallas_src>

<mosaic_0001>
module attributes {stable_mosaic.version = 11 : i64} {
  func.func @_classifier_generator_kernel(%arg0: i32, %arg1: memref<8x32xf32, #tpu.memory_space<vmem>>, %arg2: memref<32x128xf32, #tpu.memory_space<vmem>>, %arg3: memref<1x128xf32, #tpu.memory_space<vmem>>, %arg4: memref<128x128xf32, #tpu.memory_space<vmem>>, %arg5: memref<1x128xf32, #tpu.memory_space<vmem>>, %arg6: memref<8x128xf32, #tpu.memory_space<vmem>>) attributes {dimension_semantics = [#tpu.dimension_semantics<parallel>], iteration_bounds = array<i64: 2>, scalar_prefetch = 0 : i64, scratch_operands = 0 : i64, tpu.core_type = #tpu.core_type<tc>, window_params = [{transform_indices = @transform_0, window_bounds = array<i64: 8, 32>}, {pipeline_mode = #tpu.pipeline_mode<synchronous>, transform_indices = @transform_1, window_bounds = array<i64: 32, 128>}, {pipeline_mode = #tpu.pipeline_mode<synchronous>, transform_indices = @transform_2, window_bounds = array<i64: 1, 128>}, {pipeline_mode = #tpu.pipeline_mode<synchronous>, transform_indices = @transform_3, window_bounds = array<i64: 128, 128>}, {pipeline_mode = #tpu.pipeline_mode<synchronous>, transform_indices = @transform_4, window_bounds = array<i64: 1, 128>}, {transform_indices = @transform_5, window_bounds = array<i64: 8, 128>}]} {
    %c0 = arith.constant 0 : index
    %c0_0 = arith.constant 0 : index
    %0 = vector.load %arg1[%c0, %c0_0] : memref<8x32xf32, #tpu.memory_space<vmem>>, vector<8x32xf32>
    %c0_1 = arith.constant 0 : index
    %c0_2 = arith.constant 0 : index
    %1 = vector.load %arg2[%c0_1, %c0_2] : memref<32x128xf32, #tpu.memory_space<vmem>>, vector<32x128xf32>
    %cst = arith.constant dense<0.000000e+00> : vector<8x128xf32>
    %2 = tpu.matmul %0, %1, %cst {dimension_numbers = #tpu.dot_dimension_numbers<[1], [0], [0], [1], [0, 0, 1, 1], [], []>} : vector<8x32xf32>, vector<32x128xf32>, vector<8x128xf32> -> vector<8x128xf32>
    %c0_3 = arith.constant 0 : index
    %c0_4 = arith.constant 0 : index
    %3 = vector.load %arg3[%c0_3, %c0_4] : memref<1x128xf32, #tpu.memory_space<vmem>>, vector<1x128xf32>
    %4 = vector.broadcast %3 : vector<1x128xf32> to vector<8x128xf32>
    %5 = arith.addf %2, %4 : vector<8x128xf32>
    %cst_5 = arith.constant 0.000000e+00 : f32
    %6 = vector.broadcast %cst_5 : f32 to vector<8x128xf32>
    %7 = arith.maximumf %5, %6 : vector<8x128xf32>
    %c0_6 = arith.constant 0 : index
    %c0_7 = arith.constant 0 : index
    %8 = vector.load %arg4[%c0_6, %c0_7] : memref<128x128xf32, #tpu.memory_space<vmem>>, vector<128x128xf32>
    %cst_8 = arith.constant dense<0.000000e+00> : vector<8x128xf32>
    %9 = tpu.matmul %7, %8, %cst_8 {dimension_numbers = #tpu.dot_dimension_numbers<[1], [0], [0], [1], [0, 0, 1, 1], [], []>} : vector<8x128xf32>, vector<128x128xf32>, vector<8x128xf32> -> vector<8x128xf32>
    %c0_9 = arith.constant 0 : index
    %c0_10 = arith.constant 0 : index
    %10 = vector.load %arg5[%c0_9, %c0_10] : memref<1x128xf32, #tpu.memory_space<vmem>>, vector<1x128xf32>
    %11 = vector.broadcast %10 : vector<1x128xf32> to vector<8x128xf32>
    %12 = arith.addf %9, %11 : vector<8x128xf32>
    %13 = tpu.iota {dimensions = array<i32: 1>} : vector<8x128xi32>
    %c16_i32 = arith.constant 16 : i32
    %14 = vector.broadcast %c16_i32 : i32 to vector<8x128xi32>
    %15 = arith.cmpi sge, %13, %14 : vector<8x128xi32>
    %cst_11 = arith.constant 0.000000e+00 : f32
    %16 = vector.broadcast %cst_11 : f32 to vector<8x128xf32>
    %17 = arith.maximumf %12, %16 : vector<8x128xf32>
    %18 = math.absf %12 : vector<8x128xf32>
    %cst_12 = arith.constant 0.000000e+00 : f32
    %19 = vector.broadcast %cst_12 : f32 to vector<8x128xf32>
    %20 = arith.subf %19, %18 : vector<8x128xf32>
    %21 = math.exp %20 : vector<8x128xf32>
    %22 = math.log1p %21 : vector<8x128xf32>
    %23 = arith.addf %17, %22 : vector<8x128xf32>
    %cst_13 = arith.constant 2.000000e+01 : f32
    %24 = vector.broadcast %cst_13 : f32 to vector<8x128xf32>
    %25 = arith.cmpf ole, %12, %24 : vector<8x128xf32>
    %26 = arith.andi %15, %25 : vector<8x128xi1>
    %27 = arith.select %26, %23, %12 : vector<8x128xi1>, vector<8x128xf32>
    %c0_14 = arith.constant 0 : index
    %c0_15 = arith.constant 0 : index
    %28 = vector.load %arg6[%c0_14, %c0_15] : memref<8x128xf32, #tpu.memory_space<vmem>>, vector<8x128xf32>
    tpu.vector_store %arg6[%c0_14, %c0_15], %27 {strides = array<i32>} : memref<8x128xf32, #tpu.memory_space<vmem>>, vector<8x128xf32>,
    return
  }
  func.func @transform_0(%arg0: i32) -> (i32, i32) {
    %c0_i32 = arith.constant 0 : i32
    %c0_i32_0 = arith.constant 0 : i32
    return %arg0, %c0_i32 : i32, i32
  }
  func.func @transform_1(%arg0: i32) -> (i32, i32) {
    %c0_i32 = arith.constant 0 : i32
    %c0_i32_0 = arith.constant 0 : i32
    %c0_i32_1 = arith.constant 0 : i32
    return %c0_i32, %c0_i32_0 : i32, i32
  }
  func.func @transform_2(%arg0: i32) -> (i32, i32) {
    %c0_i32 = arith.constant 0 : i32
    %c0_i32_0 = arith.constant 0 : i32
    %c0_i32_1 = arith.constant 0 : i32
    return %c0_i32, %c0_i32_0 : i32, i32
  }
  func.func @transform_3(%arg0: i32) -> (i32, i32) {
    %c0_i32 = arith.constant 0 : i32
    %c0_i32_0 = arith.constant 0 : i32
    %c0_i32_1 = arith.constant 0 : i32
    return %c0_i32, %c0_i32_0 : i32, i32
  }
  func.func @transform_4(%arg0: i32) -> (i32, i32) {
    %c0_i32 = arith.constant 0 : i32
    %c0_i32_0 = arith.constant 0 : i32
    %c0_i32_1 = arith.constant 0 : i32
    return %c0_i32, %c0_i32_0 : i32, i32
  }
  func.func @transform_5(%arg0: i32) -> (i32, i32) {
    %c0_i32 = arith.constant 0 : i32
    %c0_i32_0 = arith.constant 0 : i32
    return %arg0, %c0_i32 : i32, i32
  }
}

</mosaic_0001>

<bundles_post_ra>
// kernel: tpu_custom_call.1
= control target key start
LH: loop header
LB: loop body
LE: loop exit
PB: predicated region body
PF: predicated region fallthrough
CT: control target
= control target key end

     0   :  { %10 = vsyncpa [#allocation3], 0  ;;  %s1206_s0 = inlined_call_operand.hbm [shape: f32[16,32], index: 0, kind: input, shape index: {}]   ;;  %s1207_s1 = inlined_call_operand.hbm [shape: f32[32,128], index: 1, kind: input, shape index: {}]   ;;  %s1208_s2 = inlined_call_operand.vmem [shape: f32[1,128], index: 2, kind: input, shape index: {}]   ;;  %s1209_s3 = inlined_call_operand.hbm [shape: f32[128,128], index: 3, kind: input, shape index: {}]   ;;  %s1210_s4 = inlined_call_operand.vmem [shape: f32[1,128], index: 4, kind: input, shape index: {}]   ;;  %s1211_s5 = inlined_call_operand.hbm [shape: f32[16,128], index: 5, kind: output, shape index: {}]  }
   0x1   :  { %12 = vsyncpa [#allocation3 + $0x1], 0 }
   0x2   :  { %13 = vsyncpa [#allocation6], 0 }
   0x3   :  { %14 = vsyncpa [#allocation4], 0 }
   0x4   :  { %16 = vsyncpa [#allocation4 + $0x1], 0  ;;  %s964_s18 = smov 0   ;;  %s966_s19 = smov 0  }
   0x5   :  { %s968_s20 = smov 0   ;;  %s970_s21 = smov 0  }
   0x6 LB: > { %s985_s22 = sadd.s32 4294967295, %s923_s21   ;;  %s574_s23 = sadd.s32 4294967294, %s923_s21   ;;  %s923_s21 = sphi %s970_s21, %s1231_s21   ;;  %s919_s20 = sphi %s968_s20, %s1230_s20   ;;  %s915_s19 = sphi %s966_s19, %s1229_s19   ;;  %s911_s18 = sphi %s964_s18, %s1228_s18  }
   0x7   : > { %p42_p0 = scmp.ne.s32.totalorder %s915_s19, %s911_s18  ;;  %p1212_p1 = scmp.eq.s32.totalorder %s985_s22, 0 }
   0x8   : > { %p156_p3 = scmp.eq.s32.totalorder %s574_s23, 1  ;;  %p575_p5 = scmp.ge.s32.totalorder %s923_s21, 1 }
   0x9   : > { %p994_p4 = por %p1212_p1, %p42_p0  ;;  %p163_p7 = scmp.lt.s32.totalorder %s923_s21, 3 }
   0xa   : > { %p999_p6 = por %p156_p3, %p42_p0  ;;  %s925_s27 = smov [#allocation5]  }
   0xb   : > { %s1215_s24 = scalar_select %p994_p4, 1, 0 }
   0xc   : > { %s1216_s25 = scalar_select %p999_p6, 1, 0 }
   0xd   : > { %p1004_p8 = pnand %p575_p5, %p163_p7  ;;  %s175_s28 = sshll.u32 %s925_s27, 4  ;;  %s1008_s28 = int_to_ptr.vmem [resolvable:$true] %s175_s28 }
   0xe   : > { %s926_s30 = smov [#allocation7]   ;;  %s767_s9 = scalar_lea.hbm %s1207_s1, 512 }
   0xf   : > { %p703_p9 = pneg %p1004_p8  ;;  %s191_s6 = sshll.u32 %s926_s30, 4  ;;  %s1019_s6 = int_to_ptr.vmem [resolvable:$true] %s191_s6 }
  0x10   : > { %p768_p12 = scmp.ne.s32.totalorder %s1207_s1, %s767_s9  ;;  %p774_p5 = scmp.lt.u32.totalorder %s767_s9, %s1207_s1 }
  0x11   : > { %p1015_p11 = pnand %p703_p9, %p1212_p1 }
  0x13   : > { %p769_p13 = pneg %p1015_p11 }
  0x15   : > { %p770_p0 = pnand %p769_p13, %p768_p12 }
  0x17   : > { %p771_p3 = pneg %p770_p0 }
  0x19   : > { %p776_p7 = pnand %p774_p5, %p771_p3 }
  0x1b   : > { %779 = shalt.err (!%p776_p7)
}
  0x1c   : > { %s780_s14 = scalar_lea.vmem %s1008_s28, 512  ;;  %p788_p2 = scmp.lt.s32.totalorder %s1008_s28, %s1008_s28 }
  0x1d   : > { %p781_p9 = scmp.ne.s32.totalorder %s1008_s28, %s780_s14  ;;  %p789_p12 = scmp.lt.s32.totalorder %s780_s14, %s780_s14 }
  0x1f   : > { %p783_p10 = pnand %p781_p9, %p769_p13  ;;  %p790_p0 = por %p789_p12, %p788_p2 }
  0x21   : > { %p784_p1 = pneg %p783_p10 }
  0x23   : > { %p791_p6 = pnand %p790_p0, %p784_p1 }
  0x25   : > { %794 = shalt.err (!%p791_p6)
}
  0x26   : > { %s927_s15 = smov 128   ;;  %s928_s16 = smov 8  }
  0x27   : > { %706 = dma.hbm_to_vmem [thread:$0]  (!%p1015_p11), %s1207_s1, 512, %s1008_s28, [#allocation6], %s927_s15, %s927_s15, %s928_s16  }
  0x28   : > { %s795_s7 = scalar_lea.hbm %s1209_s3, 2048 }
  0x29   : > { %p796_p2 = scmp.ne.s32.totalorder %s1209_s3, %s795_s7  ;;  %p802_p10 = scmp.lt.u32.totalorder %s795_s7, %s1209_s3 }
  0x2b   : > { %p798_p1 = pnand %p796_p2, %p769_p13 }
  0x2d   : > { %p799_p6 = pneg %p798_p1 }
  0x2f   : > { %p804_p3 = pnand %p802_p10, %p799_p6 }
  0x31   : > { %807 = shalt.err (!%p804_p3)
}
  0x32   : > { %s808_s28 = scalar_lea.vmem %s1019_s6, 2048  ;;  %p816_p12 = scmp.lt.s32.totalorder %s1019_s6, %s1019_s6 }
  0x33   : > { %p809_p5 = scmp.ne.s32.totalorder %s1019_s6, %s808_s28  ;;  %p817_p0 = scmp.lt.s32.totalorder %s808_s28, %s808_s28 }
  0x35   : > { %p811_p7 = pnand %p809_p5, %p769_p13  ;;  %p818_p2 = por %p817_p0, %p816_p12 }
  0x37   : > { %p812_p9 = pneg %p811_p7 }
  0x39   : > { %p819_p1 = pnand %p818_p2, %p812_p9 }
  0x3b   : > { %822 = shalt.err (!%p819_p1)
}
  0x3c   : > { %709 = dma.hbm_to_vmem [thread:$0]  (!%p1015_p11), %s1209_s3, 2048, %s1019_s6, [#allocation6], %s927_s15, %s927_s15, %s928_s16  }
  0x3d   : > { %s1074_s14 = sadd.s32 1, %s923_s21   ;;  %s29_s29 = sadd.s32 1, %s919_s20 }
  0x3e   : > { %s26_s17 = ssub.s32 %s923_s21, %s1074_s14  ;;  %p36_p13 = scmp.ne.s32.totalorder %s919_s20, %s915_s19 }
  0x3f   : > { %p27_p6 = scmp.eq.s32.totalorder %s26_s17, 0  ;;  %p37_p10 = scmp.eq.s32.totalorder %s923_s21, 0 }
  0x40   : > { %p1219_p3 = scmp.eq.s32.totalorder %s985_s22, 1  ;;  %p720_p7 = scmp.lt.s32.totalorder %s923_s21, 2 }
  0x41   : > { %s1090_s27 = scalar_select %p27_p6, %s919_s20, %s29_s29  }
  0x42   : > { %p1084_p5 = por %p1219_p3, %p36_p13  ;;  %p38_p9 = por %p37_p10, %p36_p13 }
  0x43   : > { %s208_s30 = sand.u32 1, %s919_s20   ;;  %s580_s6 = sshll.u32 %s923_s21, 7 }
  0x44   : > { %s1220_s23 = scalar_select %p1084_p5, 1, 0 }
  0x45   : > { %s579_s7 = sshll.u32 %s208_s30, 3  ;;  %s1097_s8 = scalar_lea.hbm %s1206_s0, %s580_s6 }
  0x46   : > { %s212_s9 = scalar_lea.vmem [#allocation2], %s579_s7  ;;  %p1101_p11 = pnand %p720_p7, %p38_p9 }
  0x47   : > { %s219_s10 = sshll.u32 %s212_s9, 4  ;;  %s209_s28 = scalar_lea.sflag [#allocation3], %s208_s30  ;;  %s1099_s10 = int_to_ptr.vmem [resolvable:$true] %s219_s10 }
  0x48   : > { %s823_s12 = scalar_lea.hbm %s1097_s8, 128  ;;  %p825_p0 = pneg %p1101_p11 }
  0x49   : > { %p824_p12 = scmp.ne.s32.totalorder %s1097_s8, %s823_s12  ;;  %s828_s17 = scalar_lea.hbm %s1206_s0, 256 }
  0x4a   : > { %p829_p13 = scmp.lt.u32.totalorder %s1097_s8, %s1206_s0  ;;  %p830_p6 = scmp.lt.u32.totalorder %s828_s17, %s823_s12 }
  0x4b   : > { %p826_p2 = pnand %p825_p0, %p824_p12  ;;  %p832_p3 = scmp.lt.u32.totalorder %s823_s12, %s1097_s8 }
  0x4c   : > { %p831_p10 = por %p830_p6, %p829_p13 }
  0x4d   : > { %p827_p1 = pneg %p826_p2 }
  0x4e   : > { %p833_p7 = por %p832_p3, %p831_p10 }
  0x50   : > { %p834_p9 = pnand %p833_p7, %p827_p1 }
  0x52   : > { %837 = shalt.err (!%p834_p9)
}
  0x53   : > { %s838_s30 = scalar_lea.vmem %s1099_s10, 128  ;;  %s929_s15 = smov [#allocation2]  }
  0x54   : > { %p839_p12 = scmp.ne.s32.totalorder %s1099_s10, %s838_s30  ;;  %s843_s16 = sshll.u32 %s929_s15, 4  ;;  %s844_s16 = int_to_ptr.vmem [resolvable:$false] %s843_s16 }
  0x55   : > { %s845_s9 = scalar_lea.vmem %s844_s16, 256  ;;  %p846_p4 = scmp.lt.s32.totalorder %s1099_s10, %s844_s16 }
  0x56   : > { %p841_p2 = pnand %p839_p12, %p825_p0  ;;  %p847_p13 = scmp.lt.s32.totalorder %s845_s9, %s838_s30 }
  0x58   : > { %p842_p5 = pneg %p841_p2  ;;  %p848_p6 = por %p847_p13, %p846_p4 }
  0x5a   : > { %p849_p10 = pnand %p848_p6, %p842_p5 }
  0x5c   : > { %852 = shalt.err (!%p849_p10)
}
  0x5d   : > { %713 = dma.hbm_to_vmem [thread:$0]  (!%p1101_p11), %s1097_s8, 128, %s1099_s10, %s209_s28  }
  0x5e   : > { %228 = sbr.rel (%p1004_p8) target bundleno = 595 (0x253), region = 40  ;;  %s1133_s12 = sand.u32 (!%p1004_p8), 1, %s915_s19  }
  0x5f   : > { %s582_s13 = sshll.u32 (!%p1004_p8), %s1133_s12, 3  ;;  %s231_s29 = scalar_lea.sflag (!%p1004_p8), [#allocation3], %s1133_s12 }
  0x60   : > { %s1139_s17 = scalar_lea.vmem (!%p1004_p8), [#allocation2], %s582_s13  ;;  %p1222_p4 = scmp.ne.s32.totalorder (!%p1004_p8), %s1215_s24, 0 }
  0x65   : > { %898 = dma.done.wait (%p1222_p4), %s231_s29, 128  }
  0x66   : > { %900 = vsyncadd (%p1222_p4), %s231_s29, 4294967168  ;;  %p1223_p5 = scmp.eq.s32.totalorder %s985_s22, 0 }
  0x68   : > { %902 = dma.done.wait (%p1223_p5), [#allocation6], 2560   ;;  %p1224_p8 = pmov %p1223_p5 }
  0x69   : > { %v930_v0 = vmov 0.0|0.0   ;;  %vm931_vm0 = vmmov 0   ;;  %v932_v1 = vmov 0.0   ;;  %v270_v2 = vld [vmem:[#allocation5] sm:$0xff]  ;;  %v271_v3 = vld [vmem:[#allocation5 + $0x8] sm:$0xff]  ;;  %v272_v4 = vld [vmem:[#allocation5 + $0x10] sm:$0xff]  ;;  %v449_v47 = vlaneseq }
  0x6a   : > { %904 = vsyncadd (%p1224_p8), [#allocation6], 4294964736  ;;  %661 = vmatprep.subr.bf16.mxu0 %v930_v0  ;;  %623 = vmatprep.mubr.msk.f32.mxu0 %vm931_vm0, %v932_v1  ;;  %v662_v5 = vpack.c.bf16 %v271_v3, %v270_v2  ;;  %v273_v6 = vld [vmem:[#allocation5 + $0x18] sm:$0xff]  ;;  %v356_v7 = vld [vmem:[#allocation7] sm:$0xff]  ;;  %vm281_vm1 = vcmask 261120   ;;  %s590_s11 = sshll.u32 %s985_s22, 7 }
  0x6b   : > { %667 = vmatprep.subr.bf16.mxu1 %v930_v0  ;;  %658 = vmatprep.mubr.msk.f32.mxu1 %vm931_vm0, %v932_v1  ;;  %v357_v8 = vld [vmem:[#allocation7 + $0x8] sm:$0xff]  ;;  %v358_v9 = vld [vmem:[#allocation7 + $0x10] sm:$0xff]  ;;  %v359_v10 = vld [vmem:[#allocation7 + $0x18] sm:$0xff]  ;;  %v665_v11 = vpack.c.bf16 %v273_v6, %v272_v4  ;;  %v450_v49 = vand.u32 127, %v449_v47  ;;  %s268_s28 = scalar_lea.vmem [#allocation8], %s582_s13  ;;  %s1162_s15 = scalar_lea.hbm %s1211_s5, %s590_s11 }
  0x6c   : > { %663 = vmatpush3.bf16.msra.mxu0 %v662_v5  ;;  %v668_v12 = vpack.c.bf16 %v357_v8, %v356_v7  ;;  %v671_v13 = vpack.c.bf16 %v359_v10, %v358_v9  ;;  %v360_v14 = vld [vmem:[#allocation7 + $0x20] sm:$0xff]  ;;  %v361_v15 = vld [vmem:[#allocation7 + $0x28] sm:$0xff]  ;;  %v269_v16 = vld [vmem:[%s1139_s17] sm:$0xff]  ;;  %s485_s7 = sshll.u32 %s268_s28, 4  ;;  %s472_s16 = scalar_lea.sflag [#allocation4], %s1133_s12  ;;  %s1164_s7 = int_to_ptr.vmem [resolvable:$true] %s485_s7 }
  0x6d   : > { %664 = vmatprep.subr.bf16.mxu0 %v930_v0  ;;  %v674_v17 = vpack.c.bf16 %v361_v15, %v360_v14  ;;  %v362_v18 = vld [vmem:[#allocation7 + $0x30] sm:$0xff]  ;;  %v363_v19 = vld [vmem:[#allocation7 + $0x38] sm:$0xff]  ;;  %v364_v21 = vld [vmem:[#allocation7 + $0x40] sm:$0xff]  ;;  %vm451_vm2 = vcmp.ge.s32.totalorder %v450_v49, 16  ;;  %s853_s22 = scalar_lea.vmem %s1164_s7, 128  ;;  %p1225_p0 = scmp.ne.s32.totalorder %s1220_s23, 0 }
  0x6e   : > { %669 = vmatpush3.bf16.msra.mxu1 %v668_v12  ;;  %v677_v20 = vpack.c.bf16 %v363_v19, %v362_v18  ;;  %v365_v22 = vld [vmem:[#allocation7 + $0x48] sm:$0xff]  ;;  %v366_v24 = vld [vmem:[#allocation7 + $0x50] sm:$0xff]  ;;  %v367_v25 = vld [vmem:[#allocation7 + $0x58] sm:$0xff]  ;;  %p854_p11 = scmp.ne.s32.totalorder %s1164_s7, %s853_s22  ;;  %s933_s9 = smov [#allocation8]  }
  0x6f   : > { %670 = vmatprep.subr.bf16.mxu1 %v930_v0  ;;  %v680_v23 = vpack.c.bf16 %v365_v22, %v364_v21  ;;  %v683_v26 = vpack.c.bf16 %v367_v25, %v366_v24  ;;  %v368_v27 = vld [vmem:[#allocation7 + $0x60] sm:$0xff]  ;;  %v369_v28 = vld [vmem:[#allocation7 + $0x68] sm:$0xff]  ;;  %v370_v30 = vld [vmem:[#allocation7 + $0x70] sm:$0xff]  ;;  %s857_s13 = sshll.u32 %s933_s9, 4  ;;  %s858_s13 = int_to_ptr.vmem [resolvable:$false] %s857_s13 }
  0x70   : > { %666 = vmatpush3.bf16.msra.mxu0 %v665_v11  ;;  %v686_v29 = vpack.c.bf16 %v369_v28, %v368_v27  ;;  %v371_v31 = vld [vmem:[#allocation7 + $0x78] sm:$0xff]  ;;  %v586_v33 = vld [vmem:[%s1208_s2] ss:$0 sm:$0xff]  ;;  %p855_p1 = pnand %p854_p11, %p1225_p0  ;;  %s859_s29 = scalar_lea.vmem %s858_s13, 256 }
  0x71   : > { %v689_v32 = vpack.c.bf16 %v371_v31, %v370_v30  ;;  %v588_v38 = vld [vmem:[%s1210_s4] ss:$0 sm:$0xff]  ;;  %p860_p7 = scmp.lt.s32.totalorder %s1164_s7, %s858_s13  ;;  %p861_p9 = scmp.lt.s32.totalorder %s859_s29, %s853_s22 }
  0x72   : > { %672 = vmatpush3.bf16.msra.mxu1 %v671_v13  ;;  %p856_p3 = pneg %p855_p1 }
  0x73   : > { %624 = vmatmul.mubr.msk.f32.vlgmr.msra.gmra.mrb[0].mxu0 %vm281_vm1, %v269_v16  ;;  %673 = vmatprep.subr.bf16.mxu1 %v930_v0  ;;  %p862_p12 = por %p861_p9, %p860_p7 }
  0x75   : > { %p863_p2 = pnand %p862_p12, %p856_p3 }
  0x76   : > { %675 = vmatpush3.bf16.msra.mxu1 %v674_v17 }
  0x77   : > { %676 = vmatprep.subr.bf16.mxu1 %v930_v0 }
  0x7a   : > { %678 = vmatpush3.bf16.msra.mxu1 %v677_v20 }
  0x7b   : > { %679 = vmatprep.subr.bf16.mxu1 %v930_v0 }
  0x7e   : > { %681 = vmatpush3.bf16.msra.mxu1 %v680_v23 }
  0x7f   : > { %682 = vmatprep.subr.bf16.mxu1 %v930_v0 }
  0x82   : > { %684 = vmatpush3.bf16.msra.mxu1 %v683_v26 }
  0x83   : > { %685 = vmatprep.subr.bf16.mxu1 %v930_v0 }
  0x86   : > { %687 = vmatpush3.bf16.msra.mxu1 %v686_v29 }
  0x87   : > { %688 = vmatprep.subr.bf16.mxu1 %v930_v0 }
  0x8a   : > { %690 = vmatpush3.bf16.msra.mxu1 %v689_v32 }
 0x146   : > { %v351_v34 = vpop.f32.mrb[0].mxu0 }
 0x147   : > { %v352_v35 = vadd.f32 %v586_v33, %v351_v34  ;;  %v625_v36 = vpop.f32.mrb[1].mxu0 }
 0x149   : > { %v355_v37 = vmax.f32 %v352_v35, 0.0 }
 0x14b   : > { %659 = vmatmul.mubr.f32.vlgmr.msra.gmra.mrb[0].mxu1 %v355_v37 }
 0x21e   : > { %v445_v39 = vpop.f32.mrb[0].mxu1 }
 0x21f   : > { %v446_v40 = vadd.f32 %v588_v38, %v445_v39  ;;  %v660_v41 = vpop.f32.mrb[1].mxu1 }
 0x221   : > { %v453_v42 = vand.u32 2147483647, %v446_v40  ;;  %v452_v55 = vmax.f32 %v446_v40, 0.0  ;;  %vm467_vm4 = vcmp.le.f32.partialorder %v446_v40, 20.0 }
 0x222   : > { %vm468_vm5 = vmand %vm451_vm2, %vm467_vm4 }
 0x223   : > { %v454_v43 = vsub.f32 0.0, %v453_v42 }
 0x225   : > { %v455_v44 = vmul.f32 1.442695, %v454_v43 }
 0x227   : > { %763 = vpow2.f32 %v455_v44 }
 0x231   : > { %v764_v45 = vpop.eup %763 }
 0x232   : > { %v457_v46 = vadd.f32 1.0, %v764_v45  ;;  %v460_v48 = vmul.f32 -0.5, %v764_v45  ;;  %v463_v51 = vand.u32 2147483647, %v764_v45 }
 0x234   : > { %765 = vlog2.f32 %v457_v46  ;;  %v461_v50 = vadd.f32 1.0, %v460_v48  ;;  %vm464_vm3 = vcmp.lt.f32.partialorder %v463_v51, 0.0004427343 }
 0x236   : > { %v462_v54 = vmul.f32 %v764_v45, %v461_v50 }
 0x23e   : > { %v766_v52 = vpop.eup %765 }
 0x23f   : > { %v459_v53 = vmul.f32 0.6931472, %v766_v52 }
 0x241   : > { %v465_v56 = vsel %vm464_vm3, %v462_v54, %v459_v53 }
 0x242   : > { %v466_v57 = vadd.f32 %v465_v56, %v452_v55 }
 0x244   : > { %v469_v58 = vsel %vm468_vm5, %v466_v57, %v446_v40 }
 0x245   : > { %470 = vst [vmem:[%s268_s28] sm:$0xff] %v469_v58 }
 0x246   : > { %866 = shalt.err (!%p863_p2)
}
 0x247   : > { %s867_s12 = scalar_lea.hbm %s1162_s15, 128  ;;  %s871_s26 = scalar_lea.hbm %s1211_s5, 256 }
 0x248   : > { %p868_p13 = scmp.ne.s32.totalorder %s1162_s15, %s867_s12  ;;  %p872_p4 = scmp.lt.u32.totalorder %s1162_s15, %s1211_s5 }
 0x249   : > { %p873_p5 = scmp.lt.u32.totalorder %s871_s26, %s867_s12  ;;  %p875_p11 = scmp.lt.u32.totalorder %s867_s12, %s1162_s15 }
 0x24a   : > { %p869_p6 = pnand %p868_p13, %p1225_p0 }
 0x24b   : > { %p874_p8 = por %p873_p5, %p872_p4 }
 0x24c   : > { %p870_p10 = pneg %p869_p6 }
 0x24d   : > { %p876_p1 = por %p875_p11, %p874_p8 }
 0x24f   : > { %p877_p3 = pnand %p876_p1, %p870_p10 }
 0x251   : > { %880 = shalt.err (!%p877_p3)
}
 0x252   : > { %701 = dma.vmem_to_hbm [thread:$0]  (%p1225_p0), %s1164_s7, 128, %s1162_s15, %s472_s16  }
 0x253 PF: > { %s497_s11 = sand.u32 1, %s911_s18   ;;  %p1226_p7 = scmp.ne.s32.totalorder %s1216_s25, 0 }
 0x254   : > { %p1227_p9 = scmp.ge.s32.totalorder %s923_s21, 2  ;;  %s498_s28 = scalar_lea.sflag [#allocation4], %s497_s11 }
 0x256   : > { %p715_p12 = pnand %p1227_p9, %p1226_p7 }
 0x258   : > { %906 = dma.done.wait (!%p715_p12), %s498_s28, 128  }
 0x259   : > { %908 = vsyncadd (!%p715_p12), %s498_s28, 4294967168  ;;  %p19_p2 = scmp.ge.s32.totalorder %s1074_s14, 4   ;;  %s1228_s18 = smov %s915_s19 }
 0x25a   : > { %s1229_s19 = smov %s919_s20  ;;  %s1230_s20 = smov %s1090_s27 }
 0x25b   : > { %s1231_s21 = smov %s1074_s14  ;;  %21 = sbr.rel (!%p19_p2) target bundleno = 6 (0x6), region = 93 }
 0x262   :  { %503 = vsyncpa [#allocation3], 1 }
 0x263   :  { %505 = vsyncpa [#allocation3 + $0x1], 1 }
 0x264   :  { %506 = vsyncpa [#allocation6], 1 }
 0x265   :  { %507 = vsyncpa [#allocation4], 1 }
 0x266   :  { %509 = vsyncpa [#allocation4 + $0x1], 1 }

</bundles_post_ra>
